<compile_context>
chip_gen: v7x
topology: tpu7x:2x2x1
jax: 0.10.0
libtpu: 0.0.40
codegen_flags: <defaults>
</compile_context>

<pallas_src>
import jax
import jax.numpy as jnp
from jax.experimental import pallas as pl
from jax.experimental.pallas import tpu as pltpu

EPS = 1e-5


# ---------------------------------------------------------------------------
# In-kernel helpers
# ---------------------------------------------------------------------------
def _conv3x3_rows(y, w_ref, pad_ref):
    """3x3 conv on lane-dense rows.

    y:       (H, W*Cin) lane-dense activation rows.
    w_ref:   (3, W*Cin, W*Cout) banded weight matrices (one per dy).
    pad_ref: (H+2, W*Cin) VMEM halo scratch.
    Returns  (H, W*Cout) float32.
    """
    H, WCi = y.shape
    Hp = H + 2

    # 1-px top/bottom halo built in VMEM (no HBM pad round-trip). The W (dx)
    # boundary handling lives in the band structure of w_ref.
    pad_ref[0:1, :] = jnp.zeros((1, WCi), jnp.float32)
    pad_ref[Hp - 1:Hp, :] = jnp.zeros((1, WCi), jnp.float32)
    pad_ref[1:1 + H, :] = y

    z = jnp.dot(pad_ref[0:H, :], w_ref[0], preferred_element_type=jnp.float32)
    z = z + jnp.dot(pad_ref[1:1 + H, :], w_ref[1],
                    preferred_element_type=jnp.float32)
    z = z + jnp.dot(pad_ref[2:2 + H, :], w_ref[2],
                    preferred_element_type=jnp.float32)
    return z


def _write_stats(stats_ref, z):
    """Per-(w, cout) column partial sums (sublane reduction only), lane-dense."""
    wco = z.shape[-1]
    s = jnp.sum(z, axis=0, keepdims=True)
    ss = jnp.sum(z * z, axis=0, keepdims=True)
    stats_ref[...] = jnp.concatenate([s, ss], axis=0).reshape(1, 2, wco)


# ---------------------------------------------------------------------------
# Kernels
# ---------------------------------------------------------------------------
def _conv_stats_kernel(x_ref, w_ref, z_ref, stats_ref, pad_ref):
    """conv1 (banded matmuls) + per-image lane-dense BN statistics."""
    H = x_ref.shape[1]
    WCo = z_ref.shape[-1]
    z = _conv3x3_rows(x_ref[0], w_ref, pad_ref)
    z_ref[...] = z.reshape(1, H, WCo)
    _write_stats(stats_ref, z)


def _bn_relu_conv_stats_kernel(z1_ref, scale_ref, shift_ref, w_ref,
                               z2_ref, stats_ref, pad_ref):
    """BN1 (folded affine) + ReLU + conv2 (banded matmuls) + statistics."""
    H = z1_ref.shape[1]
    WCo = z2_ref.shape[-1]
    y = jnp.maximum(z1_ref[0] * scale_ref[...] + shift_ref[...], 0.0)
    z = _conv3x3_rows(y, w_ref, pad_ref)
    z2_ref[...] = z.reshape(1, H, WCo)
    _write_stats(stats_ref, z)


def _bn_relu_kernel(z_ref, scale_ref, shift_ref, out_ref):
    """Final BN2 + ReLU on a lane-dense (1, H, W*Cout) block."""
    out_ref[...] = jnp.maximum(z_ref[...] * scale_ref[...] + shift_ref[...], 0.0)


# ---------------------------------------------------------------------------
# Wrapper
# ---------------------------------------------------------------------------
def _banded_conv_weights(w_oihw, width):
    """PyTorch (Cout, Cin, 3, 3) -> (3, width*Cin, width*Cout) banded matrices.

    B[dy][(w+dx-1)*Cin + ci, w*Cout + co] = w_oihw[co, ci, dy, dx]; the dx
    band (and the left/right zero-padding) is absorbed into the matrix so the
    kernel needs no cross-lane gather at all.
    """
    wt = jnp.transpose(w_oihw, (2, 3, 1, 0)).astype(jnp.float32)  # (dy,dx,ci,co)
    mats = []
    for dy in range(3):
        b = None
        for dx in range(3):
            shift = jnp.eye(width, k=1 - dx, dtype=jnp.float32)   # [wp,w]=1 iff wp=w+dx-1
            term = jnp.kron(shift, wt[dy, dx])                    # (W*Cin, W*Cout)
            b = term if b is None else b + term
        mats.append(b)
    return jnp.stack(mats, axis=0)


def _bn_affine(stats, count, gamma, beta, width):
    """Reduce per-image (sum, sumsq) column partials -> per-channel (scale, shift)."""
    c = gamma.shape[0]
    st = stats.reshape(stats.shape[0], 2, width, c).sum(axis=(0, 2))  # (2, C)
    mean = st[0] / count
    var = jnp.maximum(st[1] / count - mean * mean, 0.0)   # clamp vs. cancellation
    scale = gamma.astype(jnp.float32) * jax.lax.rsqrt(var + EPS)
    shift = beta.astype(jnp.float32) - mean * scale
    return scale, shift


def double_conv(x_nchw, params):
    """x_nchw: (N, Cin, H, W) float32. Returns (N, Cout, H, W) float32."""
    w1, b1, g1, bt1, w2, b2, g2, bt2 = params
    # Conv bias immediately followed by training-mode BN cancels exactly.
    del b1, b2

    N, Cin, H, W = x_nchw.shape
    Cout = w1.shape[0]
    M = N * H * W
    WC1, WC2 = W * Cin, W * Cout

    # NCHW -> lane-dense (N, H, W*Cin).
    # TODO(synk): fold this transpose (and the final one) into the kernels.
    x_ld = jnp.transpose(x_nchw, (0, 2, 3, 1)).reshape(N, H, WC1).astype(jnp.float32)

    b1m = _banded_conv_weights(w1, W)   # (3, W*Cin,  W*Cout)
    b2m = _banded_conv_weights(w2, W)   # (3, W*Cout, W*Cout)

    parallel = pltpu.CompilerParams(dimension_semantics=("parallel",))

    # ---- pass 1: conv1 + per-image column stats ----------------------------
    z1, st1 = pl.pallas_call(
        _conv_stats_kernel,
        grid=(N,),
        in_specs=[
            pl.BlockSpec((1, H, WC1), lambda n: (n, 0, 0)),
            pl.BlockSpec((3, WC1, WC2), lambda n: (0, 0, 0)),
        ],
        out_specs=[
            pl.BlockSpec((1, H, WC2), lambda n: (n, 0, 0)),
            pl.BlockSpec((1, 2, WC2), lambda n: (n, 0, 0)),
        ],
        out_shape=[
            jax.ShapeDtypeStruct((N, H, WC2), jnp.float32),
            jax.ShapeDtypeStruct((N, 2, WC2), jnp.float32),
        ],
        scratch_shapes=[pltpu.VMEM((H + 2, WC1), jnp.float32)],
        compiler_params=parallel,
    )(x_ld, b1m)

    scale1, shift1 = _bn_affine(st1, M, g1, bt1, W)

    # ---- pass 2: BN1+ReLU (affine) -> conv2 + per-image column stats -------
    z2, st2 = pl.pallas_call(
        _bn_relu_conv_stats_kernel,
        grid=(N,),
        in_specs=[
            pl.BlockSpec((1, H, WC2), lambda n: (n, 0, 0)),
            pl.BlockSpec((1, WC2), lambda n: (0, 0)),
            pl.BlockSpec((1, WC2), lambda n: (0, 0)),
            pl.BlockSpec((3, WC2, WC2), lambda n: (0, 0, 0)),
        ],
        out_specs=[
            pl.BlockSpec((1, H, WC2), lambda n: (n, 0, 0)),
            pl.BlockSpec((1, 2, WC2), lambda n: (n, 0, 0)),
        ],
        out_shape=[
            jax.ShapeDtypeStruct((N, H, WC2), jnp.float32),
            jax.ShapeDtypeStruct((N, 2, WC2), jnp.float32),
        ],
        scratch_shapes=[pltpu.VMEM((H + 2, WC2), jnp.float32)],
        compiler_params=parallel,
    )(z1, jnp.tile(scale1, W).reshape(1, WC2),
      jnp.tile(shift1, W).reshape(1, WC2), b2m)

    scale2, shift2 = _bn_affine(st2, M, g2, bt2, W)

    # ---- pass 3: BN2 + ReLU on the lane-dense layout ------------------------
    out_ld = pl.pallas_call(
        _bn_relu_kernel,
        grid=(N,),
        in_specs=[
            pl.BlockSpec((1, H, WC2), lambda n: (n, 0, 0)),
            pl.BlockSpec((1, WC2), lambda n: (0, 0)),
            pl.BlockSpec((1, WC2), lambda n: (0, 0)),
        ],
        out_specs=pl.BlockSpec((1, H, WC2), lambda n: (n, 0, 0)),
        out_shape=jax.ShapeDtypeStruct((N, H, WC2), jnp.float32),
        compiler_params=parallel,
    )(z2, jnp.tile(scale2, W).reshape(1, WC2),
      jnp.tile(shift2, W).reshape(1, WC2))

    out_nhwc = out_ld.reshape(N, H, W, Cout)
    return jnp.transpose(out_nhwc, (0, 3, 1, 2))


# ---------------------------------------------------------------------------
# Reference / params / test
# ---------------------------------------------------------------------------
def _reference(x_nchw, params):
    """Plain-JAX reference (PyTorch training-mode BN semantics)."""
    w1, b1, g1, bt1, w2, b2, g2, bt2 = params

    def conv(x, w, b):
        y = jax.lax.conv_general_dilated(
            x, w, window_strides=(1, 1), padding=((1, 1), (1, 1)),
            dimension_numbers=("NCHW", "OIHW", "NCHW"))
        return y + b[None, :, None, None]

    def bn(x, g, bt):
        mean = jnp.mean(x, axis=(0, 2, 3), keepdims=True)
        var = jnp.mean((x - mean) ** 2, axis=(0, 2, 3), keepdims=True)
        return (x - mean) * jax.lax.rsqrt(var + EPS) * g[None, :, None, None] \
            + bt[None, :, None, None]

    y = jnp.maximum(bn(conv(x_nchw, w1, b1), g1, bt1), 0.0)
    y = jnp.maximum(bn(conv(y, w2, b2), g2, bt2), 0.0)
    return y


def init_params(key, in_channels, out_channels):
    k1, k2, k3, k4 = jax.random.split(key, 4)
    fan1 = in_channels * 9
    fan2 = out_channels * 9
    w1 = jax.random.uniform(k1, (out_channels, in_channels, 3, 3),
                            jnp.float32, -1.0, 1.0) / jnp.sqrt(fan1)
    b1 = jax.random.uniform(k2, (out_channels,), jnp.float32, -1.0, 1.0) / jnp.sqrt(fan1)
    w2 = jax.random.uniform(k3, (out_channels, out_channels, 3, 3),
                            jnp.float32, -1.0, 1.0) / jnp.sqrt(fan2)
    b2 = jax.random.uniform(k4, (out_channels,), jnp.float32, -1.0, 1.0) / jnp.sqrt(fan2)
    # BatchNorm2d defaults: weight=1, bias=0.
    g1 = jnp.ones((out_channels,), jnp.float32)
    bt1 = jnp.zeros((out_channels,), jnp.float32)
    g2 = jnp.ones((out_channels,), jnp.float32)
    bt2 = jnp.zeros((out_channels,), jnp.float32)
    return (w1, b1, g1, bt1, w2, b2, g2, bt2)


if __name__ == "__main__":
    key = jax.random.PRNGKey(0)
    kx, kp = jax.random.split(key)

    N, Cin, Cout, H, W = 2, 4, 8, 16, 16
    x = jax.random.normal(kx, (N, Cin, H, W), jnp.float32)
    params = init_params(kp, Cin, Cout)

    out = jax.block_until_ready(jax.jit(double_conv)(x, params))
    ref = jax.block_until_ready(_reference(x, params))

    assert out.shape == (N, Cout, H, W), out.shape
    err = float(jnp.max(jnp.abs(out - ref)))
    assert err < 1e-4, f"max abs error {err}"
    print("KERNEL_OK")
</pallas_src>

<mosaic_0001>
module attributes {stable_mosaic.version = 11 : i64} {
  func.func @_conv_stats_kernel(%arg0: i32, %arg1: memref<1x16x64xf32, #tpu.memory_space<vmem>>, %arg2: memref<3x64x128xf32, #tpu.memory_space<vmem>>, %arg3: memref<1x16x128xf32, #tpu.memory_space<vmem>>, %arg4: memref<1x2x128xf32, #tpu.memory_space<vmem>>, %arg5: memref<18x64xf32, #tpu.memory_space<vmem>>) attributes {dimension_semantics = [#tpu.dimension_semantics<parallel>], iteration_bounds = array<i64: 2>, scalar_prefetch = 0 : i64, scratch_operands = 1 : i64, tpu.core_type = #tpu.core_type<tc>, window_params = [{transform_indices = @transform_0, window_bounds = array<i64: 1, 16, 64>}, {pipeline_mode = #tpu.pipeline_mode<synchronous>, transform_indices = @transform_1, window_bounds = array<i64: 3, 64, 128>}, {transform_indices = @transform_2, window_bounds = array<i64: 1, 16, 128>}, {transform_indices = @transform_3, window_bounds = array<i64: 1, 2, 128>}]} {
    %c0 = arith.constant 0 : index
    %c0_0 = arith.constant 0 : index
    %c0_1 = arith.constant 0 : index
    %0 = vector.load %arg1[%c0, %c0_0, %c0_1] : memref<1x16x64xf32, #tpu.memory_space<vmem>>, vector<1x16x64xf32>
    %1 = vector.shape_cast %0 : vector<1x16x64xf32> to vector<16x64xf32>
    %cst = arith.constant 0.000000e+00 : f32
    %2 = vector.broadcast %cst : f32 to vector<1x64xf32>
    %c0_2 = arith.constant 0 : index
    %c0_3 = arith.constant 0 : index
    %3 = vector.load %arg5[%c0_2, %c0_3] : memref<18x64xf32, #tpu.memory_space<vmem>>, vector<1x64xf32>
    tpu.vector_store %arg5[%c0_2, %c0_3], %2 {strides = array<i32>} : memref<18x64xf32, #tpu.memory_space<vmem>>, vector<1x64xf32>,
    %cst_4 = arith.constant 0.000000e+00 : f32
    %4 = vector.broadcast %cst_4 : f32 to vector<1x64xf32>
    %c17 = arith.constant 17 : index
    %c0_5 = arith.constant 0 : index
    %5 = vector.load %arg5[%c17, %c0_5] : memref<18x64xf32, #tpu.memory_space<vmem>>, vector<1x64xf32>
    tpu.vector_store %arg5[%c17, %c0_5], %4 {strides = array<i32>} : memref<18x64xf32, #tpu.memory_space<vmem>>, vector<1x64xf32>,
    %c1 = arith.constant 1 : index
    %c0_6 = arith.constant 0 : index
    %6 = vector.load %arg5[%c1, %c0_6] : memref<18x64xf32, #tpu.memory_space<vmem>>, vector<16x64xf32>
    tpu.vector_store %arg5[%c1, %c0_6], %1 {strides = array<i32>} : memref<18x64xf32, #tpu.memory_space<vmem>>, vector<16x64xf32>,
    %c0_7 = arith.constant 0 : index
    %c0_8 = arith.constant 0 : index
    %7 = vector.load %arg5[%c0_7, %c0_8] : memref<18x64xf32, #tpu.memory_space<vmem>>, vector<16x64xf32>
    %c0_9 = arith.constant 0 : index
    %c0_10 = arith.constant 0 : index
    %c0_11 = arith.constant 0 : index
    %8 = vector.load %arg2[%c0_9, %c0_10, %c0_11] : memref<3x64x128xf32, #tpu.memory_space<vmem>>, vector<1x64x128xf32>
    %9 = vector.shape_cast %8 : vector<1x64x128xf32> to vector<64x128xf32>
    %cst_12 = arith.constant dense<0.000000e+00> : vector<16x128xf32>
    %10 = tpu.matmul %7, %9, %cst_12 {dimension_numbers = #tpu.dot_dimension_numbers<[1], [0], [0], [1], [0, 0, 1, 1], [], []>} : vector<16x64xf32>, vector<64x128xf32>, vector<16x128xf32> -> vector<16x128xf32>
    %c1_13 = arith.constant 1 : index
    %c0_14 = arith.constant 0 : index
    %11 = vector.load %arg5[%c1_13, %c0_14] : memref<18x64xf32, #tpu.memory_space<vmem>>, vector<16x64xf32>
    %c1_15 = arith.constant 1 : index
    %c0_16 = arith.constant 0 : index
    %c0_17 = arith.constant 0 : index
    %12 = vector.load %arg2[%c1_15, %c0_16, %c0_17] : memref<3x64x128xf32, #tpu.memory_space<vmem>>, vector<1x64x128xf32>
    %13 = vector.shape_cast %12 : vector<1x64x128xf32> to vector<64x128xf32>
    %cst_18 = arith.constant dense<0.000000e+00> : vector<16x128xf32>
    %14 = tpu.matmul %11, %13, %cst_18 {dimension_numbers = #tpu.dot_dimension_numbers<[1], [0], [0], [1], [0, 0, 1, 1], [], []>} : vector<16x64xf32>, vector<64x128xf32>, vector<16x128xf32> -> vector<16x128xf32>
    %15 = arith.addf %10, %14 : vector<16x128xf32>
    %c2 = arith.constant 2 : index
    %c0_19 = arith.constant 0 : index
    %16 = vector.load %arg5[%c2, %c0_19] : memref<18x64xf32, #tpu.memory_space<vmem>>, vector<16x64xf32>
    %c2_20 = arith.constant 2 : index
    %c0_21 = arith.constant 0 : index
    %c0_22 = arith.constant 0 : index
    %17 = vector.load %arg2[%c2_20, %c0_21, %c0_22] : memref<3x64x128xf32, #tpu.memory_space<vmem>>, vector<1x64x128xf32>
    %18 = vector.shape_cast %17 : vector<1x64x128xf32> to vector<64x128xf32>
    %cst_23 = arith.constant dense<0.000000e+00> : vector<16x128xf32>
    %19 = tpu.matmul %16, %18, %cst_23 {dimension_numbers = #tpu.dot_dimension_numbers<[1], [0], [0], [1], [0, 0, 1, 1], [], []>} : vector<16x64xf32>, vector<64x128xf32>, vector<16x128xf32> -> vector<16x128xf32>
    %20 = arith.addf %15, %19 : vector<16x128xf32>
    %21 = vector.shape_cast %20 : vector<16x128xf32> to vector<1x16x128xf32>
    %c0_24 = arith.constant 0 : index
    %c0_25 = arith.constant 0 : index
    %c0_26 = arith.constant 0 : index
    %22 = vector.load %arg3[%c0_24, %c0_25, %c0_26] : memref<1x16x128xf32, #tpu.memory_space<vmem>>, vector<1x16x128xf32>
    tpu.vector_store %arg3[%c0_24, %c0_25, %c0_26], %21 {strides = array<i32>} : memref<1x16x128xf32, #tpu.memory_space<vmem>>, vector<1x16x128xf32>,
    %cst_27 = arith.constant dense<0.000000e+00> : vector<128xf32>
    %23 = vector.multi_reduction <add>, %20, %cst_27 [0] : vector<16x128xf32> to vector<128xf32>
    %24 = vector.shape_cast %23 : vector<128xf32> to vector<1x128xf32>
    %25 = arith.mulf %20, %20 : vector<16x128xf32>
    %cst_28 = arith.constant dense<0.000000e+00> : vector<128xf32>
    %26 = vector.multi_reduction <add>, %25, %cst_28 [0] : vector<16x128xf32> to vector<128xf32>
    %27 = vector.shape_cast %26 : vector<128xf32> to vector<1x128xf32>
    %28 = tpu.concatenate %24, %27 in 0 : vector<1x128xf32>, vector<1x128xf32> -> vector<2x128xf32>
    %29 = vector.shape_cast %28 : vector<2x128xf32> to vector<1x2x128xf32>
    %c0_29 = arith.constant 0 : index
    %c0_30 = arith.constant 0 : index
    %c0_31 = arith.constant 0 : index
    %30 = vector.load %arg4[%c0_29, %c0_30, %c0_31] : memref<1x2x128xf32, #tpu.memory_space<vmem>>, vector<1x2x128xf32>
    tpu.vector_store %arg4[%c0_29, %c0_30, %c0_31], %29 {strides = array<i32>} : memref<1x2x128xf32, #tpu.memory_space<vmem>>, vector<1x2x128xf32>,
    return
  }
  func.func @transform_0(%arg0: i32) -> (i32, i32, i32) {
    %c0_i32 = arith.constant 0 : i32
    %c0_i32_0 = arith.constant 0 : i32
    %c0_i32_1 = arith.constant 0 : i32
    return %arg0, %c0_i32, %c0_i32_0 : i32, i32, i32
  }
  func.func @transform_1(%arg0: i32) -> (i32, i32, i32) {
    %c0_i32 = arith.constant 0 : i32
    %c0_i32_0 = arith.constant 0 : i32
    %c0_i32_1 = arith.constant 0 : i32
    %c0_i32_2 = arith.constant 0 : i32
    return %c0_i32, %c0_i32_0, %c0_i32_1 : i32, i32, i32
  }
  func.func @transform_2(%arg0: i32) -> (i32, i32, i32) {
    %c0_i32 = arith.constant 0 : i32
    %c0_i32_0 = arith.constant 0 : i32
    %c0_i32_1 = arith.constant 0 : i32
    return %arg0, %c0_i32, %c0_i32_0 : i32, i32, i32
  }
  func.func @transform_3(%arg0: i32) -> (i32, i32, i32) {
    %c0_i32 = arith.constant 0 : i32
    %c0_i32_0 = arith.constant 0 : i32
    %c0_i32_1 = arith.constant 0 : i32
    return %arg0, %c0_i32, %c0_i32_0 : i32, i32, i32
  }
}

module attributes {stable_mosaic.version = 11 : i64} {
  func.func @_bn_relu_conv_stats_kernel(%arg0: i32, %arg1: memref<1x16x128xf32, #tpu.memory_space<vmem>>, %arg2: memref<1x128xf32, #tpu.memory_space<vmem>>, %arg3: memref<1x128xf32, #tpu.memory_space<vmem>>, %arg4: memref<3x128x128xf32, #tpu.memory_space<vmem>>, %arg5: memref<1x16x128xf32, #tpu.memory_space<vmem>>, %arg6: memref<1x2x128xf32, #tpu.memory_space<vmem>>, %arg7: memref<18x128xf32, #tpu.memory_space<vmem>>) attributes {dimension_semantics = [#tpu.dimension_semantics<parallel>], iteration_bounds = array<i64: 2>, scalar_prefetch = 0 : i64, scratch_operands = 1 : i64, tpu.core_type = #tpu.core_type<tc>, window_params = [{transform_indices = @transform_0, window_bounds = array<i64: 1, 16, 128>}, {pipeline_mode = #tpu.pipeline_mode<synchronous>, transform_indices = @transform_1, window_bounds = array<i64: 1, 128>}, {pipeline_mode = #tpu.pipeline_mode<synchronous>, transform_indices = @transform_2, window_bounds = array<i64: 1, 128>}, {pipeline_mode = #tpu.pipeline_mode<synchronous>, transform_indices = @transform_3, window_bounds = array<i64: 3, 128, 128>}, {transform_indices = @transform_4, window_bounds = array<i64: 1, 16, 128>}, {transform_indices = @transform_5, window_bounds = array<i64: 1, 2, 128>}]} {
    %c0 = arith.constant 0 : index
    %c0_0 = arith.constant 0 : index
    %c0_1 = arith.constant 0 : index
    %0 = vector.load %arg1[%c0, %c0_0, %c0_1] : memref<1x16x128xf32, #tpu.memory_space<vmem>>, vector<1x16x128xf32>
    %1 = vector.shape_cast %0 : vector<1x16x128xf32> to vector<16x128xf32>
    %c0_2 = arith.constant 0 : index
    %c0_3 = arith.constant 0 : index
    %2 = vector.load %arg2[%c0_2, %c0_3] : memref<1x128xf32, #tpu.memory_space<vmem>>, vector<1x128xf32>
    %3 = vector.broadcast %2 : vector<1x128xf32> to vector<16x128xf32>
    %4 = arith.mulf %1, %3 : vector<16x128xf32>
    %c0_4 = arith.constant 0 : index
    %c0_5 = arith.constant 0 : index
    %5 = vector.load %arg3[%c0_4, %c0_5] : memref<1x128xf32, #tpu.memory_space<vmem>>, vector<1x128xf32>
    %6 = vector.broadcast %5 : vector<1x128xf32> to vector<16x128xf32>
    %7 = arith.addf %4, %6 : vector<16x128xf32>
    %cst = arith.constant 0.000000e+00 : f32
    %8 = vector.broadcast %cst : f32 to vector<16x128xf32>
    %9 = arith.maximumf %7, %8 : vector<16x128xf32>
    %cst_6 = arith.constant 0.000000e+00 : f32
    %10 = vector.broadcast %cst_6 : f32 to vector<1x128xf32>
    %c0_7 = arith.constant 0 : index
    %c0_8 = arith.constant 0 : index
    %11 = vector.load %arg7[%c0_7, %c0_8] : memref<18x128xf32, #tpu.memory_space<vmem>>, vector<1x128xf32>
    tpu.vector_store %arg7[%c0_7, %c0_8], %10 {strides = array<i32>} : memref<18x128xf32, #tpu.memory_space<vmem>>, vector<1x128xf32>,
    %cst_9 = arith.constant 0.000000e+00 : f32
    %12 = vector.broadcast %cst_9 : f32 to vector<1x128xf32>
    %c17 = arith.constant 17 : index
    %c0_10 = arith.constant 0 : index
    %13 = vector.load %arg7[%c17, %c0_10] : memref<18x128xf32, #tpu.memory_space<vmem>>, vector<1x128xf32>
    tpu.vector_store %arg7[%c17, %c0_10], %12 {strides = array<i32>} : memref<18x128xf32, #tpu.memory_space<vmem>>, vector<1x128xf32>,
    %c1 = arith.constant 1 : index
    %c0_11 = arith.constant 0 : index
    %14 = vector.load %arg7[%c1, %c0_11] : memref<18x128xf32, #tpu.memory_space<vmem>>, vector<16x128xf32>
    tpu.vector_store %arg7[%c1, %c0_11], %9 {strides = array<i32>} : memref<18x128xf32, #tpu.memory_space<vmem>>, vector<16x128xf32>,
    %c0_12 = arith.constant 0 : index
    %c0_13 = arith.constant 0 : index
    %15 = vector.load %arg7[%c0_12, %c0_13] : memref<18x128xf32, #tpu.memory_space<vmem>>, vector<16x128xf32>
    %c0_14 = arith.constant 0 : index
    %c0_15 = arith.constant 0 : index
    %c0_16 = arith.constant 0 : index
    %16 = vector.load %arg4[%c0_14, %c0_15, %c0_16] : memref<3x128x128xf32, #tpu.memory_space<vmem>>, vector<1x128x128xf32>
    %17 = vector.shape_cast %16 : vector<1x128x128xf32> to vector<128x128xf32>
    %cst_17 = arith.constant dense<0.000000e+00> : vector<16x128xf32>
    %18 = tpu.matmul %15, %17, %cst_17 {dimension_numbers = #tpu.dot_dimension_numbers<[1], [0], [0], [1], [0, 0, 1, 1], [], []>} : vector<16x128xf32>, vector<128x128xf32>, vector<16x128xf32> -> vector<16x128xf32>
    %c1_18 = arith.constant 1 : index
    %c0_19 = arith.constant 0 : index
    %19 = vector.load %arg7[%c1_18, %c0_19] : memref<18x128xf32, #tpu.memory_space<vmem>>, vector<16x128xf32>
    %c1_20 = arith.constant 1 : index
    %c0_21 = arith.constant 0 : index
    %c0_22 = arith.constant 0 : index
    %20 = vector.load %arg4[%c1_20, %c0_21, %c0_22] : memref<3x128x128xf32, #tpu.memory_space<vmem>>, vector<1x128x128xf32>
    %21 = vector.shape_cast %20 : vector<1x128x128xf32> to vector<128x128xf32>
    %cst_23 = arith.constant dense<0.000000e+00> : vector<16x128xf32>
    %22 = tpu.matmul %19, %21, %cst_23 {dimension_numbers = #tpu.dot_dimension_numbers<[1], [0], [0], [1], [0, 0, 1, 1], [], []>} : vector<16x128xf32>, vector<128x128xf32>, vector<16x128xf32> -> vector<16x128xf32>
    %23 = arith.addf %18, %22 : vector<16x128xf32>
    %c2 = arith.constant 2 : index
    %c0_24 = arith.constant 0 : index
    %24 = vector.load %arg7[%c2, %c0_24] : memref<18x128xf32, #tpu.memory_space<vmem>>, vector<16x128xf32>
    %c2_25 = arith.constant 2 : index
    %c0_26 = arith.constant 0 : index
    %c0_27 = arith.constant 0 : index
    %25 = vector.load %arg4[%c2_25, %c0_26, %c0_27] : memref<3x128x128xf32, #tpu.memory_space<vmem>>, vector<1x128x128xf32>
    %26 = vector.shape_cast %25 : vector<1x128x128xf32> to vector<128x128xf32>
    %cst_28 = arith.constant dense<0.000000e+00> : vector<16x128xf32>
    %27 = tpu.matmul %24, %26, %cst_28 {dimension_numbers = #tpu.dot_dimension_numbers<[1], [0], [0], [1], [0, 0, 1, 1], [], []>} : vector<16x128xf32>, vector<128x128xf32>, vector<16x128xf32> -> vector<16x128xf32>
    %28 = arith.addf %23, %27 : vector<16x128xf32>
    %29 = vector.shape_cast %28 : vector<16x128xf32> to vector<1x16x128xf32>
    %c0_29 = arith.constant 0 : index
    %c0_30 = arith.constant 0 : index
    %c0_31 = arith.constant 0 : index
    %30 = vector.load %arg5[%c0_29, %c0_30, %c0_31] : memref<1x16x128xf32, #tpu.memory_space<vmem>>, vector<1x16x128xf32>
    tpu.vector_store %arg5[%c0_29, %c0_30, %c0_31], %29 {strides = array<i32>} : memref<1x16x128xf32, #tpu.memory_space<vmem>>, vector<1x16x128xf32>,
    %cst_32 = arith.constant dense<0.000000e+00> : vector<128xf32>
    %31 = vector.multi_reduction <add>, %28, %cst_32 [0] : vector<16x128xf32> to vector<128xf32>
    %32 = vector.shape_cast %31 : vector<128xf32> to vector<1x128xf32>
    %33 = arith.mulf %28, %28 : vector<16x128xf32>
    %cst_33 = arith.constant dense<0.000000e+00> : vector<128xf32>
    %34 = vector.multi_reduction <add>, %33, %cst_33 [0] : vector<16x128xf32> to vector<128xf32>
    %35 = vector.shape_cast %34 : vector<128xf32> to vector<1x128xf32>
    %36 = tpu.concatenate %32, %35 in 0 : vector<1x128xf32>, vector<1x128xf32> -> vector<2x128xf32>
    %37 = vector.shape_cast %36 : vector<2x128xf32> to vector<1x2x128xf32>
    %c0_34 = arith.constant 0 : index
    %c0_35 = arith.constant 0 : index
    %c0_36 = arith.constant 0 : index
    %38 = vector.load %arg6[%c0_34, %c0_35, %c0_36] : memref<1x2x128xf32, #tpu.memory_space<vmem>>, vector<1x2x128xf32>
    tpu.vector_store %arg6[%c0_34, %c0_35, %c0_36], %37 {strides = array<i32>} : memref<1x2x128xf32, #tpu.memory_space<vmem>>, vector<1x2x128xf32>,
    return
  }
  func.func @transform_0(%arg0: i32) -> (i32, i32, i32) {
    %c0_i32 = arith.constant 0 : i32
    %c0_i32_0 = arith.constant 0 : i32
    %c0_i32_1 = arith.constant 0 : i32
    return %arg0, %c0_i32, %c0_i32_0 : i32, i32, i32
  }
  func.func @transform_1(%arg0: i32) -> (i32, i32) {
    %c0_i32 = arith.constant 0 : i32
    %c0_i32_0 = arith.constant 0 : i32
    %c0_i32_1 = arith.constant 0 : i32
    return %c0_i32, %c0_i32_0 : i32, i32
  }
  func.func @transform_2(%arg0: i32) -> (i32, i32) {
    %c0_i32 = arith.constant 0 : i32
    %c0_i32_0 = arith.constant 0 : i32
    %c0_i32_1 = arith.constant 0 : i32
    return %c0_i32, %c0_i32_0 : i32, i32
  }
  func.func @transform_3(%arg0: i32) -> (i32, i32, i32) {
    %c0_i32 = arith.constant 0 : i32
    %c0_i32_0 = arith.constant 0 : i32
    %c0_i32_1 = arith.constant 0 : i32
    %c0_i32_2 = arith.constant 0 : i32
    return %c0_i32, %c0_i32_0, %c0_i32_1 : i32, i32, i32
  }
  func.func @transform_4(%arg0: i32) -> (i32, i32, i32) {
    %c0_i32 = arith.constant 0 : i32
    %c0_i32_0 = arith.constant 0 : i32
    %c0_i32_1 = arith.constant 0 : i32
    return %arg0, %c0_i32, %c0_i32_0 : i32, i32, i32
  }
  func.func @transform_5(%arg0: i32) -> (i32, i32, i32) {
    %c0_i32 = arith.constant 0 : i32
    %c0_i32_0 = arith.constant 0 : i32
    %c0_i32_1 = arith.constant 0 : i32
    return %arg0, %c0_i32, %c0_i32_0 : i32, i32, i32
  }
}

module attributes {stable_mosaic.version = 11 : i64} {
  func.func @_bn_relu_kernel(%arg0: i32, %arg1: memref<1x16x128xf32, #tpu.memory_space<vmem>>, %arg2: memref<1x128xf32, #tpu.memory_space<vmem>>, %arg3: memref<1x128xf32, #tpu.memory_space<vmem>>, %arg4: memref<1x16x128xf32, #tpu.memory_space<vmem>>) attributes {dimension_semantics = [#tpu.dimension_semantics<parallel>], iteration_bounds = array<i64: 2>, scalar_prefetch = 0 : i64, scratch_operands = 0 : i64, tpu.core_type = #tpu.core_type<tc>, window_params = [{transform_indices = @transform_0, window_bounds = array<i64: 1, 16, 128>}, {pipeline_mode = #tpu.pipeline_mode<synchronous>, transform_indices = @transform_1, window_bounds = array<i64: 1, 128>}, {pipeline_mode = #tpu.pipeline_mode<synchronous>, transform_indices = @transform_2, window_bounds = array<i64: 1, 128>}, {transform_indices = @transform_3, window_bounds = array<i64: 1, 16, 128>}]} {
    %c0 = arith.constant 0 : index
    %c0_0 = arith.constant 0 : index
    %c0_1 = arith.constant 0 : index
    %0 = vector.load %arg1[%c0, %c0_0, %c0_1] : memref<1x16x128xf32, #tpu.memory_space<vmem>>, vector<1x16x128xf32>
    %c0_2 = arith.constant 0 : index
    %c0_3 = arith.constant 0 : index
    %1 = vector.load %arg2[%c0_2, %c0_3] : memref<1x128xf32, #tpu.memory_space<vmem>>, vector<1x128xf32>
    %2 = vector.shape_cast %1 : vector<1x128xf32> to vector<1x1x128xf32>
    %3 = vector.broadcast %2 : vector<1x1x128xf32> to vector<1x16x128xf32>
    %4 = arith.mulf %0, %3 : vector<1x16x128xf32>
    %c0_4 = arith.constant 0 : index
    %c0_5 = arith.constant 0 : index
    %5 = vector.load %arg3[%c0_4, %c0_5] : memref<1x128xf32, #tpu.memory_space<vmem>>, vector<1x128xf32>
    %6 = vector.shape_cast %5 : vector<1x128xf32> to vector<1x1x128xf32>
    %7 = vector.broadcast %6 : vector<1x1x128xf32> to vector<1x16x128xf32>
    %8 = arith.addf %4, %7 : vector<1x16x128xf32>
    %cst = arith.constant 0.000000e+00 : f32
    %9 = vector.broadcast %cst : f32 to vector<1x16x128xf32>
    %10 = arith.maximumf %8, %9 : vector<1x16x128xf32>
    %c0_6 = arith.constant 0 : index
    %c0_7 = arith.constant 0 : index
    %c0_8 = arith.constant 0 : index
    %11 = vector.load %arg4[%c0_6, %c0_7, %c0_8] : memref<1x16x128xf32, #tpu.memory_space<vmem>>, vector<1x16x128xf32>
    tpu.vector_store %arg4[%c0_6, %c0_7, %c0_8], %10 {strides = array<i32>} : memref<1x16x128xf32, #tpu.memory_space<vmem>>, vector<1x16x128xf32>,
    return
  }
  func.func @transform_0(%arg0: i32) -> (i32, i32, i32) {
    %c0_i32 = arith.constant 0 : i32
    %c0_i32_0 = arith.constant 0 : i32
    %c0_i32_1 = arith.constant 0 : i32
    return %arg0, %c0_i32, %c0_i32_0 : i32, i32, i32
  }
  func.func @transform_1(%arg0: i32) -> (i32, i32) {
    %c0_i32 = arith.constant 0 : i32
    %c0_i32_0 = arith.constant 0 : i32
    %c0_i32_1 = arith.constant 0 : i32
    return %c0_i32, %c0_i32_0 : i32, i32
  }
  func.func @transform_2(%arg0: i32) -> (i32, i32) {
    %c0_i32 = arith.constant 0 : i32
    %c0_i32_0 = arith.constant 0 : i32
    %c0_i32_1 = arith.constant 0 : i32
    return %c0_i32, %c0_i32_0 : i32, i32
  }
  func.func @transform_3(%arg0: i32) -> (i32, i32, i32) {
    %c0_i32 = arith.constant 0 : i32
    %c0_i32_0 = arith.constant 0 : i32
    %c0_i32_1 = arith.constant 0 : i32
    return %arg0, %c0_i32, %c0_i32_0 : i32, i32, i32
  }
}

</mosaic_0001>

<bundles_post_ra>
// kernel: tile.28
= control target key start
LH: loop header
LB: loop body
LE: loop exit
PB: predicated region body
PF: predicated region fallthrough
CT: control target
= control target key end

     0   :  { %s28_s0 = inlined_call_operand.vmem [shape: f32[8], index: 0, kind: input, shape index: {}]   ;;  %s29_s1 = inlined_call_operand.vmem [shape: f32[16,8], index: 1, kind: output, shape index: {}]  }
   0x1   :  { %v4_v0 = vld [vmem:[%s28_s0] ss:$0 sm:$0xff] }
   0x2   :  { %5 = vst [vmem:[%s29_s1] sm:$0xff] %v4_v0  ;;  %8 = vst [vmem:[%s29_s1 + $0x8] sm:$0xff] %v4_v0 }

// kernel: tile.29
= control target key start
LH: loop header
LB: loop body
LE: loop exit
PB: predicated region body
PF: predicated region fallthrough
CT: control target
= control target key end

     0   :  { %s131_s10 = smov 120   ;;  %s132_s11 = smov 104   ;;  %vm3_vm0 = vcmask 64512   ;;  %vm9_vm1 = vcmask 1048512   ;;  %vm15_vm2 = vcmask 982912   ;;  %vm21_vm3 = vcmask 917312   ;;  %s207_s0 = inlined_call_operand.vmem [shape: f32[16,8], index: 0, kind: input, shape index: {}]   ;;  %s208_s1 = inlined_call_operand.vmem [shape: f32[1,128], index: 1, kind: output, shape index: {}]  }
   0x1   :  { %v101_v0 = vld [vmem:[%s207_s0 + $0xf] sm:$0x1]   ;;  %v103_v1 = vld [vmem:[%s207_s0 + $0xd] sm:$0x1]   ;;  %v102_v2 = vld [vmem:[%s207_s0 + $0xe] sm:$0x1]  }
   0x2   :  { %7 = vrot.lane.b32.xlu0 %v101_v0, %s131_s10  ;;  %19 = vrot.lane.b32.xlu1 %v103_v1, %s132_s11  ;;  %v104_v3 = vld [vmem:[%s207_s0 + $0xc] sm:$0x1]   ;;  %s133_s16 = smov 112   ;;  %s134_s17 = smov 96   ;;  %v105_v4 = vld [vmem:[%s207_s0 + $0xb] sm:$0x1]  }
   0x3   :  { %v106_v5 = vld [vmem:[%s207_s0 + $0xa] sm:$0x1]   ;;  %v2_v6 = vld [vmem:[%s207_s0] sm:$0x1]   ;;  %s135_s24 = smov 88   ;;  %s136_s25 = smov 80  }
   0x4   :  { %4 = vst.msk [vmem:[#allocation0] sm:$0x1] %vm3_vm0, %v2_v6   ;;  %v107_v7 = vld [vmem:[%s207_s0 + $0x9] sm:$0x1]   ;;  %v108_v8 = vld [vmem:[%s207_s0 + $0x8] sm:$0x1]  }
   0x5   :  { %s137_s30 = smov 72   ;;  %s138_s2 = smov 64   ;;  %v109_v9 = vld [vmem:[%s207_s0 + $0x7] sm:$0x1]   ;;  %v110_v10 = vld [vmem:[%s207_s0 + $0x6] sm:$0x1]  }
   0x6   :  { %13 = vrot.lane.b32.xlu0 %v102_v2, %s133_s16  ;;  %25 = vrot.lane.b32.xlu1 %v104_v3, %s134_s17  ;;  %s139_s7 = smov 56   ;;  %s140_s8 = smov 48   ;;  %v111_v11 = vld [vmem:[%s207_s0 + $0x5] sm:$0x1]   ;;  %v112_v12 = vld [vmem:[%s207_s0 + $0x4] sm:$0x1]  }
   0x7   :  { %s141_s13 = smov 40   ;;  %s142_s14 = smov 32   ;;  %v113_v13 = vld [vmem:[%s207_s0 + $0x3] sm:$0x1]   ;;  %v114_v14 = vld [vmem:[%s207_s0 + $0x2] sm:$0x1]  }
   0x8   :  { %s143_s19 = smov 24   ;;  %s144_s20 = smov 16   ;;  %v115_v15 = vld [vmem:[%s207_s0 + $0x1] sm:$0x1]   ;;  %vm27_vm4 = vcmask 851712   ;;  %vm33_vm5 = vcmask 786112  }
   0x9   :  { %s145_s0 = smov 8   ;;  %vm39_vm6 = vcmask 720512   ;;  %vm45_vm7 = vcmask 654912   ;;  %vm51_vm8 = vcmask 589312   ;;  %vm57_vm9 = vcmask 523712  }
   0xa   :  { %31 = vrot.lane.b32.xlu0 %v105_v4, %s135_s24  ;;  %37 = vrot.lane.b32.xlu1 %v106_v5, %s136_s25  ;;  %vm63_vm10 = vcmask 458112   ;;  %vm69_vm11 = vcmask 392512   ;;  %vm75_vm12 = vcmask 326912   ;;  %vm81_vm13 = vcmask 261312  }
   0xb   :  { %vm87_vm14 = vcmask 195712   ;;  %vm93_vm15 = vcmask 130112  }
   0xe   :  { %43 = vrot.lane.b32.xlu0 %v107_v7, %s137_s30  ;;  %49 = vrot.lane.b32.xlu1 %v108_v8, %s138_s2 }
  0x12   :  { %55 = vrot.lane.b32.xlu0 %v109_v9, %s139_s7  ;;  %61 = vrot.lane.b32.xlu1 %v110_v10, %s140_s8 }
  0x16   :  { %67 = vrot.lane.b32.xlu0 %v111_v11, %s141_s13  ;;  %73 = vrot.lane.b32.xlu1 %v112_v12, %s142_s14 }
  0x1a   :  { %79 = vrot.lane.b32.xlu0 %v113_v13, %s143_s19  ;;  %85 = vrot.lane.b32.xlu1 %v114_v14, %s144_s20 }
  0x1e   :  { %91 = vrot.lane.b32.xlu0 %v115_v15, %s145_s0 }
  0x74   :  { %v8_v16 = vpop.permute.xlu0 %7   ;;  %v20_v17 = vpop.permute.xlu1 %19  }
  0x75   :  { %10 = vst.msk [vmem:[#allocation0] sm:$0x1] %vm9_vm1, %v8_v16  }
  0x78   :  { %v14_v18 = vpop.permute.xlu0 %13   ;;  %v26_v19 = vpop.permute.xlu1 %25  }
  0x79   :  { %16 = vst.msk [vmem:[#allocation0] sm:$0x1] %vm15_vm2, %v14_v18  }
  0x7a   :  { %22 = vst.msk [vmem:[#allocation0] sm:$0x1] %vm21_vm3, %v20_v17  }
  0x7b   :  { %28 = vst.msk [vmem:[#allocation0] sm:$0x1] %vm27_vm4, %v26_v19  }
  0x7c   :  { %v32_v20 = vpop.permute.xlu0 %31   ;;  %v38_v21 = vpop.permute.xlu1 %37  }
  0x7d   :  { %34 = vst.msk [vmem:[#allocation0] sm:$0x1] %vm33_vm5, %v32_v20  }
  0x7e   :  { %40 = vst.msk [vmem:[#allocation0] sm:$0x1] %vm39_vm6, %v38_v21  }
  0x80   :  { %v44_v22 = vpop.permute.xlu0 %43   ;;  %v50_v23 = vpop.permute.xlu1 %49  }
  0x81   :  { %46 = vst.msk [vmem:[#allocation0] sm:$0x1] %vm45_vm7, %v44_v22  }
  0x82   :  { %52 = vst.msk [vmem:[#allocation0] sm:$0x1] %vm51_vm8, %v50_v23  }
  0x84   :  { %v56_v24 = vpop.permute.xlu0 %55   ;;  %v62_v25 = vpop.permute.xlu1 %61  }
  0x85   :  { %58 = vst.msk [vmem:[#allocation0] sm:$0x1] %vm57_vm9, %v56_v24  }
  0x86   :  { %64 = vst.msk [vmem:[#allocation0] sm:$0x1] %vm63_vm10, %v62_v25  }
  0x88   :  { %v68_v26 = vpop.permute.xlu0 %67   ;;  %v74_v27 = vpop.permute.xlu1 %73  }
  0x89   :  { %70 = vst.msk [vmem:[#allocation0] sm:$0x1] %vm69_vm11, %v68_v26  }
  0x8a   :  { %76 = vst.msk [vmem:[#allocation0] sm:$0x1] %vm75_vm12, %v74_v27  }
  0x8c   :  { %v80_v28 = vpop.permute.xlu0 %79   ;;  %v86_v29 = vpop.permute.xlu1 %85  }
  0x8d   :  { %82 = vst.msk [vmem:[#allocation0] sm:$0x1] %vm81_vm13, %v80_v28  }
  0x8e   :  { %88 = vst.msk [vmem:[#allocation0] sm:$0x1] %vm87_vm14, %v86_v29  }
  0x90   :  { %v92_v30 = vpop.permute.xlu0 %91  }
  0x91   :  { %94 = vst.msk [vmem:[#allocation0] sm:$0x1] %vm93_vm15, %v92_v30  }
  0x98   :  { %v98_v31 = vld [vmem:[#allocation0] sm:$0x1] }
  0x99   :  { %100 = vst [vmem:[%s208_s1] sm:$0x1] %v98_v31 }

// kernel: double_conv.3
= control target key start
LH: loop header
LB: loop body
LE: loop exit
PB: predicated region body
PF: predicated region fallthrough
CT: control target
= control target key end

     0   :  { %s787_s12 = smov 0   ;;  %s895_s0 = inlined_call_operand.vmem [shape: f32[2,16,64], index: 0, kind: input, shape index: {}]   ;;  %s896_s1 = inlined_call_operand.vmem [shape: f32[3,64,128], index: 1, kind: input, shape index: {}]   ;;  %s897_s2 = inlined_call_operand.vmem [shape: f32[2,16,128], index: 2, kind: output, shape index: {0}]   ;;  %s898_s3 = inlined_call_operand.vmem [shape: f32[2,2,128], index: 3, kind: output, shape index: {1}]  }
   0x1 LB: > { %s574_s13 = sadd.s32 4294967295, %s764_s12   ;;  %p578_p0 = scmp.ge.s32.totalorder %s764_s12, 1  ;;  %s764_s12 = sphi %s787_s12, %s14_s12  }
   0x2   : > { %p140_p1 = scmp.lt.s32.totalorder %s764_s12, 3 }
   0x4   : > { %p141_p2 = pnand %p578_p0, %p140_p1 }
   0x5   : > { %v192_v0 = vld [vmem:[%s896_s1] sm:$0xff] (!%p141_p2)  ;;  %v193_v1 = vld [vmem:[%s896_s1 + $0x8] sm:$0xff] (!%p141_p2)  ;;  %v194_v2 = vld [vmem:[%s896_s1 + $0x10] sm:$0xff] (!%p141_p2)  ;;  %p168_p3 = scmp.lt.s32.totalorder (!%p141_p2), %s574_s13, 1  ;;  %vm184_vm0 = vcmask (!%p141_p2), 516096   ;;  %v766_v5 = vmov (!%p141_p2), 0.0  }
   0x6   : > { %144 = sbr.rel (%p141_p2) target bundleno = 275 (0x113), region = 28  ;;  %v713_v3 = vpack.c.bf16 (!%p141_p2), %v193_v1, %v192_v0  ;;  %v195_v4 = vld [vmem:[%s896_s1 + $0x18] sm:$0xff] (!%p141_p2)  ;;  %185 = vst.msk [vmem:[#allocation2] sm:$0x1] (!%p141_p2), %vm184_vm0, %v766_v5  ;;  %186 = vst.msk [vmem:[#allocation2 + $0x11] sm:$0x1] (!%p141_p2), %vm184_vm0, %v766_v5 }
   0x7   : > { %v717_v6 = vpack.c.bf16 (!%p141_p2), %v195_v4, %v194_v2  ;;  %v196_v7 = vld [vmem:[%s896_s1 + $0x20] sm:$0xff] (!%p141_p2)  ;;  %v197_v8 = vld [vmem:[%s896_s1 + $0x28] sm:$0xff] (!%p141_p2)  ;;  %vm187_vm1 = vcmask (!%p141_p2), 523264   ;;  %v586_v12 = vld [vmem:[%s896_s1 + $0x50] sm:$0xff] (!%p141_p2)  ;;  %vm485_vm2 = vcmask (!%p141_p2), 1040384  }
   0x8   : > { %v584_v9 = vld [vmem:[%s896_s1 + $0x40] sm:$0xff] (!%p141_p2)  ;;  %714 = vmatprep.subr.bf16.mxu0 (!%p141_p2), %v713_v3  ;;  %v585_v10 = vld [vmem:[%s896_s1 + $0x48] sm:$0xff] (!%p141_p2)  ;;  %v587_v13 = vld [vmem:[%s896_s1 + $0x58] sm:$0xff] (!%p141_p2)  ;;  %v721_v14 = vpack.c.bf16 (!%p141_p2), %v197_v8, %v196_v7 }
   0x9   : > { %716 = vmatpush3.bf16.msra.mxu0 (!%p141_p2), %v713_v3  ;;  %v697_v11 = vpack.c.bf16 (!%p141_p2), %v585_v10, %v584_v9  ;;  %v198_v15 = vld [vmem:[%s896_s1 + $0x30] sm:$0xff] (!%p141_p2)  ;;  %v701_v16 = vpack.c.bf16 (!%p141_p2), %v587_v13, %v586_v12  ;;  %v588_v17 = vld [vmem:[%s896_s1 + $0x60] sm:$0xff] (!%p141_p2)  ;;  %v589_v18 = vld [vmem:[%s896_s1 + $0x68] sm:$0xff] (!%p141_p2) }
   0xa   : > { %718 = vmatprep.subr.bf16.mxu0 (!%p141_p2), %v717_v6  ;;  %v199_v19 = vld [vmem:[%s896_s1 + $0x38] sm:$0xff] (!%p141_p2)  ;;  %v705_v22 = vpack.c.bf16 (!%p141_p2), %v589_v18, %v588_v17  ;;  %v590_v24 = vld [vmem:[%s896_s1 + $0x70] sm:$0xff] (!%p141_p2)  ;;  %v596_v26 = vld [vmem:[%s896_s1 + $0x80] sm:$0xff] (!%p141_p2) }
   0xb   : > { %698 = vmatprep.subr.bf16.mxu1 (!%p141_p2), %v697_v11  ;;  %v725_v23 = vpack.c.bf16 (!%p141_p2), %v199_v19, %v198_v15  ;;  %v591_v25 = vld [vmem:[%s896_s1 + $0x78] sm:$0xff] (!%p141_p2)  ;;  %v597_v27 = vld [vmem:[%s896_s1 + $0x88] sm:$0xff] (!%p141_p2)  ;;  %v598_v30 = vld [vmem:[%s896_s1 + $0x90] sm:$0xff] (!%p141_p2) }
   0xc   : > { %700 = vmatpush3.bf16.msra.mxu1 (!%p141_p2), %v697_v11  ;;  %v709_v28 = vpack.c.bf16 (!%p141_p2), %v591_v25, %v590_v24  ;;  %v729_v29 = vpack.c.bf16 (!%p141_p2), %v597_v27, %v596_v26  ;;  %v599_v32 = vld [vmem:[%s896_s1 + $0x98] sm:$0xff] (!%p141_p2)  ;;  %v600_v37 = vld [vmem:[%s896_s1 + $0xa0] sm:$0xff] (!%p141_p2)  ;;  %v601_v38 = vld [vmem:[%s896_s1 + $0xa8] sm:$0xff] (!%p141_p2) }
   0xd   : > { %s900_s13 = smov (!%p168_p3, %s574_s13), 1  ;;  %720 = vmatpush3.bf16.msra.mxu0 %v717_v6  ;;  %702 = vmatprep.subr.bf16.mxu1 %v701_v16  ;;  %v733_v35 = vpack.c.bf16 %v599_v32, %v598_v30  ;;  %v737_v40 = vpack.c.bf16 %v601_v38, %v600_v37  ;;  %v602_v41 = vld [vmem:[%s896_s1 + $0xb0] sm:$0xff]  ;;  %v603_v42 = vld [vmem:[%s896_s1 + $0xb8] sm:$0xff] }
   0xe   : > { %s608_s30 = sshll.u32 %s900_s13, 4  ;;  %722 = vmatprep.subr.bf16.mxu0 %v721_v14  ;;  %v741_v43 = vpack.c.bf16 %v603_v42, %v602_v41 }
   0xf   : > { %s172_s14 = scalar_lea.vmem %s895_s0, %s608_s30  ;;  %s177_s19 = scalar_lea.vmem %s897_s2, %s608_s30 }
  0x10   : > { %v182_v20 = vld [vmem:[%s172_s14] sm:$0xff]  ;;  %v183_v21 = vld [vmem:[%s172_s14 + $0x8] sm:$0xff]  ;;  %704 = vmatpush3.bf16.msra.mxu1 %v701_v16  ;;  %s583_s30 = sshll.u32 %s900_s13, 1 }
  0x11   : > { %188 = vst.msk [vmem:[#allocation2 + $0x1] sm:$0xff] %vm187_vm1, %v182_v20  ;;  %189 = vst.msk [vmem:[#allocation2 + $0x9] sm:$0xff] %vm187_vm1, %v183_v21  ;;  %724 = vmatpush3.bf16.msra.mxu0 %v721_v14  ;;  %706 = vmatprep.subr.bf16.mxu1 %v705_v22  ;;  %s181_s22 = scalar_lea.vmem %s898_s3, %s583_s30 }
  0x12   : > { %726 = vmatprep.subr.bf16.mxu0 %v725_v23 }
  0x14   : > { %708 = vmatpush3.bf16.msra.mxu1 %v705_v22 }
  0x15   : > { %728 = vmatpush3.bf16.msra.mxu0 %v725_v23  ;;  %710 = vmatprep.subr.bf16.mxu1 %v709_v28 }
  0x16   : > { %730 = vmatprep.subr.bf16.mxu0 %v729_v29 }
  0x18   : > { %v190_v31 = vld [vmem:[#allocation2] sm:$0xff]  ;;  %v191_v34 = vld [vmem:[#allocation2 + $0x8] sm:$0xff]  ;;  %712 = vmatpush3.bf16.msra.mxu1 %v709_v28 }
  0x19   : > { %v200_v33 = vld [vmem:[#allocation2 + $0x1] sm:$0xff]  ;;  %675 = vmatprep.mubr.msk.f32.mxu0 %vm187_vm1, %v190_v31  ;;  %v201_v39 = vld [vmem:[#allocation2 + $0x9] sm:$0xff] }
  0x1a   : > { %656 = vmatprep.mubr.msk.f32.mxu1 %vm187_vm1, %v200_v33  ;;  %v373_v36 = vld [vmem:[#allocation2 + $0x2] sm:$0xff]  ;;  %676 = vmatmul.mubr.msk.f32.vlgmr.msra.gmra.mrb[0].mxu0 %vm187_vm1, %v191_v34  ;;  %v374_v44 = vld [vmem:[#allocation2 + $0xa] sm:$0xff] }
  0x1b   : > { %732 = vmatpush3.bf16.msra.mxu0 %v729_v29  ;;  %694 = vmatprep.mubr.msk.f32.mxu0 %vm187_vm1, %v373_v36 }
  0x1c   : > { %734 = vmatprep.subr.bf16.mxu0 %v733_v35  ;;  %657 = vmatmul.mubr.msk.f32.vlgmr.msra.gmra.mrb[0].mxu1 %vm187_vm1, %v201_v39 }
  0x1f   : > { %736 = vmatpush3.bf16.msra.mxu0 %v733_v35 }
  0x20   : > { %738 = vmatprep.subr.bf16.mxu0 %v737_v40 }
  0x23   : > { %740 = vmatpush3.bf16.msra.mxu0 %v737_v40 }
  0x24   : > { %742 = vmatprep.subr.bf16.mxu0 %v741_v43 }
  0x27   : > { %744 = vmatpush3.bf16.msra.mxu0 %v741_v43 }
  0x2a   : > { %695 = vmatmul.mubr.msk.f32.vlgmr.msra.gmra.mrb[0].mxu0 %vm187_vm1, %v374_v44 }
  0xef   : > { %v658_v45 = vpop.f32.mrb[0].mxu1 }
  0xf0   : > { %v283_v46 = vpop.f32.mrb[1].mxu1 }
  0xfd   : > { %v696_v47 = vpop.f32.mrb[0].mxu0 }
  0xfe   : > { %v745_v48 = vadd.f32 %v696_v47, %v658_v45  ;;  %v456_v49 = vpop.f32.mrb[1].mxu0 }
  0xff   : > { %v746_v50 = vadd.f32 %v456_v49, %v283_v46 }
 0x100   : > { %468 = vst [vmem:[%s177_s19 + $0x8] sm:$0xff] %v745_v48  ;;  %v477_v51 = vmul.f32 %v745_v48, %v745_v48 }
 0x101   : > { %467 = vst [vmem:[%s177_s19] sm:$0xff] %v746_v50  ;;  %v469_v52 = vadd.f32 %v746_v50, %v745_v48  ;;  %v476_v53 = vmul.f32 %v746_v50, %v746_v50 }
 0x103   : > { %v470_v54 = vrot.slane %v469_v52, 4  ;;  %v478_v55 = vadd.f32 %v477_v51, %v476_v53 }
 0x105   : > { %v471_v56 = vadd.f32 %v470_v54, %v469_v52  ;;  %v479_v57 = vrot.slane %v478_v55, 4 }
 0x107   : > { %v472_v58 = vrot.slane %v471_v56, 2  ;;  %v480_v59 = vadd.f32 %v479_v57, %v478_v55 }
 0x109   : > { %v473_v60 = vadd.f32 %v472_v58, %v471_v56  ;;  %v481_v61 = vrot.slane %v480_v59, 2 }
 0x10b   : > { %v474_v62 = vrot.slane %v473_v60, 1  ;;  %v482_v63 = vadd.f32 %v481_v61, %v480_v59 }
 0x10d   : > { %v483_v0 = vrot.slane %v482_v63, 1  ;;  %v475_v1 = vadd.f32 %v474_v62, %v473_v60 }
 0x10f   : > { %v484_v2 = vadd.f32 %v483_v0, %v482_v63 }
 0x111   : > { %v486_v3 = vsel %vm485_vm2, %v475_v1, %v484_v2 }
 0x112   : > { %487 = vst [vmem:[%s181_s22] sm:$0x3] %v486_v3 }
 0x113 PF: > { %s14_s12 = sadd.s32 1, %s764_s12  }
 0x114   : > { %p11_p4 = scmp.ge.s32.totalorder %s14_s12, 4  }
 0x116   :  { %13 = sbr.rel (!%p11_p4) target bundleno = 1 (0x1), region = 72 }

// kernel: double_conv.4
= control target key start
LH: loop header
LB: loop body
LE: loop exit
PB: predicated region body
PF: predicated region fallthrough
CT: control target
= control target key end

     0   :  { %s1007_s18 = smov 0   ;;  %s1192_s0 = inlined_call_operand.vmem [shape: f32[2,16,128], index: 0, kind: input, shape index: {}]   ;;  %s1193_s1 = inlined_call_operand.vmem [shape: f32[1,128], index: 1, kind: input, shape index: {}]   ;;  %s1194_s2 = inlined_call_operand.vmem [shape: f32[1,128], index: 2, kind: input, shape index: {}]   ;;  %s1195_s3 = inlined_call_operand.vmem [shape: f32[3,128,128], index: 3, kind: input, shape index: {}]   ;;  %s1196_s4 = inlined_call_operand.vmem [shape: f32[2,16,128], index: 4, kind: output, shape index: {0}]   ;;  %s1197_s5 = inlined_call_operand.vmem [shape: f32[2,2,128], index: 5, kind: output, shape index: {1}]  }
   0x1 LB: > { %s652_s19 = sadd.s32 4294967295, %s974_s18   ;;  %p656_p0 = scmp.ge.s32.totalorder %s974_s18, 1  ;;  %s974_s18 = sphi %s1007_s18, %s16_s18  }
   0x2   : > { %p190_p1 = scmp.lt.s32.totalorder %s974_s18, 3 }
   0x4   : > { %p191_p2 = pnand %p656_p0, %p190_p1 }
   0x5   : > { %v264_v0 = vld [vmem:[%s1195_s3] sm:$0xff] (!%p191_p2)  ;;  %v265_v1 = vld [vmem:[%s1195_s3 + $0x8] sm:$0xff] (!%p191_p2)  ;;  %v266_v2 = vld [vmem:[%s1195_s3 + $0x10] sm:$0xff] (!%p191_p2)  ;;  %p222_p3 = scmp.lt.s32.totalorder (!%p191_p2), %s652_s19, 1  ;;  %v976_v5 = vmov (!%p191_p2), 0.0   ;;  %vm563_vm0 = vcmask (!%p191_p2), 1040384  }
   0x6   : > { %194 = sbr.rel (%p191_p2) target bundleno = 305 (0x131), region = 36  ;;  %v891_v3 = vpack.c.bf16 (!%p191_p2), %v265_v1, %v264_v0  ;;  %v267_v4 = vld [vmem:[%s1195_s3 + $0x18] sm:$0xff] (!%p191_p2)  ;;  %258 = vst [vmem:[#allocation2] sm:$0x1] (!%p191_p2), %v976_v5  ;;  %259 = vst [vmem:[#allocation2 + $0x11] sm:$0x1] (!%p191_p2), %v976_v5 }
   0x7   : > { %v895_v6 = vpack.c.bf16 (!%p191_p2), %v267_v4, %v266_v2  ;;  %v268_v7 = vld [vmem:[%s1195_s3 + $0x20] sm:$0xff] (!%p191_p2)  ;;  %v269_v8 = vld [vmem:[%s1195_s3 + $0x28] sm:$0xff] (!%p191_p2)  ;;  %v270_v9 = vld [vmem:[%s1195_s3 + $0x30] sm:$0xff] (!%p191_p2) }
   0x8   : > { %892 = vmatprep.subr.bf16.mxu0 (!%p191_p2), %v891_v3  ;;  %v899_v10 = vpack.c.bf16 (!%p191_p2), %v269_v8, %v268_v7  ;;  %v271_v11 = vld [vmem:[%s1195_s3 + $0x38] sm:$0xff] (!%p191_p2)  ;;  %v664_v12 = vld [vmem:[%s1195_s3 + $0x80] sm:$0xff] (!%p191_p2)  ;;  %v665_v13 = vld [vmem:[%s1195_s3 + $0x88] sm:$0xff] (!%p191_p2) }
   0x9   : > { %894 = vmatpush3.bf16.msra.mxu0 (!%p191_p2), %v891_v3  ;;  %v859_v14 = vpack.c.bf16 (!%p191_p2), %v665_v13, %v664_v12  ;;  %v662_v16 = vld [vmem:[%s1193_s1] ss:$0 sm:$0xff] (!%p191_p2)  ;;  %v666_v21 = vld [vmem:[%s1195_s3 + $0x90] sm:$0xff] (!%p191_p2)  ;;  %v667_v22 = vld [vmem:[%s1195_s3 + $0x98] sm:$0xff] (!%p191_p2)  ;;  %v903_v23 = vpack.c.bf16 (!%p191_p2), %v271_v11, %v270_v9 }
   0xa   : > { %896 = vmatprep.subr.bf16.mxu0 (!%p191_p2), %v895_v6  ;;  %v663_v17 = vld [vmem:[%s1194_s2] ss:$0 sm:$0xff] (!%p191_p2)  ;;  %v863_v25 = vpack.c.bf16 (!%p191_p2), %v667_v22, %v666_v21  ;;  %v669_v27 = vld [vmem:[%s1195_s3 + $0xa8] sm:$0xff] (!%p191_p2)  ;;  %v670_v33 = vld [vmem:[%s1195_s3 + $0xb0] sm:$0xff] (!%p191_p2) }
   0xb   : > { %860 = vmatprep.subr.bf16.mxu1 (!%p191_p2), %v859_v14  ;;  %v668_v26 = vld [vmem:[%s1195_s3 + $0xa0] sm:$0xff] (!%p191_p2)  ;;  %v273_v29 = vld [vmem:[%s1195_s3 + $0x48] sm:$0xff] (!%p191_p2)  ;;  %v671_v34 = vld [vmem:[%s1195_s3 + $0xb8] sm:$0xff] (!%p191_p2) }
   0xc   : > { %862 = vmatpush3.bf16.msra.mxu1 (!%p191_p2), %v859_v14  ;;  %v272_v28 = vld [vmem:[%s1195_s3 + $0x40] sm:$0xff] (!%p191_p2)  ;;  %v867_v31 = vpack.c.bf16 (!%p191_p2), %v669_v27, %v668_v26  ;;  %v274_v37 = vld [vmem:[%s1195_s3 + $0x50] sm:$0xff] (!%p191_p2)  ;;  %v275_v38 = vld [vmem:[%s1195_s3 + $0x58] sm:$0xff] (!%p191_p2)  ;;  %v871_v39 = vpack.c.bf16 (!%p191_p2), %v671_v34, %v670_v33 }
   0xd   : > { %s1199_s19 = smov (!%p222_p3, %s652_s19), 1  ;;  %898 = vmatpush3.bf16.msra.mxu0 %v895_v6  ;;  %864 = vmatprep.subr.bf16.mxu1 %v863_v25  ;;  %v907_v36 = vpack.c.bf16 %v273_v29, %v272_v28  ;;  %v672_v40 = vld [vmem:[%s1195_s3 + $0xc0] sm:$0xff]  ;;  %v673_v41 = vld [vmem:[%s1195_s3 + $0xc8] sm:$0xff]  ;;  %v911_v42 = vpack.c.bf16 %v275_v38, %v274_v37  ;;  %v674_v47 = vld [vmem:[%s1195_s3 + $0xd0] sm:$0xff] }
   0xe   : > { %s698_s9 = sshll.u32 %s1199_s19, 4  ;;  %900 = vmatprep.subr.bf16.mxu0 %v899_v10  ;;  %v276_v43 = vld [vmem:[%s1195_s3 + $0x60] sm:$0xff]  ;;  %v277_v44 = vld [vmem:[%s1195_s3 + $0x68] sm:$0xff]  ;;  %v875_v45 = vpack.c.bf16 %v673_v41, %v672_v40  ;;  %v675_v48 = vld [vmem:[%s1195_s3 + $0xd8] sm:$0xff] }
   0xf   : > { %s226_s20 = scalar_lea.vmem %s1192_s0, %s698_s9  ;;  %v915_v49 = vpack.c.bf16 %v277_v44, %v276_v43  ;;  %v278_v50 = vld [vmem:[%s1195_s3 + $0x70] sm:$0xff]  ;;  %v279_v51 = vld [vmem:[%s1195_s3 + $0x78] sm:$0xff]  ;;  %v879_v52 = vpack.c.bf16 %v675_v48, %v674_v47  ;;  %v676_v53 = vld [vmem:[%s1195_s3 + $0xe0] sm:$0xff]  ;;  %s231_s13 = scalar_lea.vmem %s1196_s4, %s698_s9 }
  0x10   : > { %v236_v15 = vld [vmem:[%s226_s20] sm:$0xff]  ;;  %v237_v19 = vld [vmem:[%s226_s20 + $0x8] sm:$0xff]  ;;  %866 = vmatpush3.bf16.msra.mxu1 %v863_v25  ;;  %v919_v55 = vpack.c.bf16 %v279_v51, %v278_v50  ;;  %v678_v59 = vld [vmem:[%s1195_s3 + $0xf0] sm:$0xff]  ;;  %s661_s9 = sshll.u32 %s1199_s19, 1 }
  0x11   : > { %v245_v18 = vmul.f32 %v662_v16, %v236_v15  ;;  %v246_v20 = vmul.f32 %v662_v16, %v237_v19  ;;  %902 = vmatpush3.bf16.msra.mxu0 %v899_v10  ;;  %868 = vmatprep.subr.bf16.mxu1 %v867_v31  ;;  %v677_v54 = vld [vmem:[%s1195_s3 + $0xe8] sm:$0xff]  ;;  %v680_v56 = vld [vmem:[%s1195_s3 + $0x100] sm:$0xff]  ;;  %v679_v60 = vld [vmem:[%s1195_s3 + $0xf8] sm:$0xff]  ;;  %s235_s16 = scalar_lea.vmem %s1197_s5, %s661_s9 }
  0x12   : > { %904 = vmatprep.subr.bf16.mxu0 %v903_v23  ;;  %v681_v57 = vld [vmem:[%s1195_s3 + $0x108] sm:$0xff]  ;;  %v883_v58 = vpack.c.bf16 %v677_v54, %v676_v53  ;;  %v682_v62 = vld [vmem:[%s1195_s3 + $0x110] sm:$0xff]  ;;  %v683_v63 = vld [vmem:[%s1195_s3 + $0x118] sm:$0xff]  ;;  %v887_v0 = vpack.c.bf16 %v679_v60, %v678_v59 }
  0x13   : > { %v254_v24 = vadd.f32 %v663_v17, %v245_v18  ;;  %v1077_v30 = vadd.f32 %v663_v17, %v246_v20  ;;  %v923_v61 = vpack.c.bf16 %v681_v57, %v680_v56  ;;  %v927_v2 = vpack.c.bf16 %v683_v63, %v682_v62  ;;  %v684_v4 = vld [vmem:[%s1195_s3 + $0x120] sm:$0xff]  ;;  %v685_v5 = vld [vmem:[%s1195_s3 + $0x128] sm:$0xff]  ;;  %v686_v7 = vld [vmem:[%s1195_s3 + $0x130] sm:$0xff] }
  0x14   : > { %870 = vmatpush3.bf16.msra.mxu1 %v867_v31  ;;  %v931_v6 = vpack.c.bf16 %v685_v5, %v684_v4  ;;  %v687_v8 = vld [vmem:[%s1195_s3 + $0x138] sm:$0xff]  ;;  %v688_v10 = vld [vmem:[%s1195_s3 + $0x140] sm:$0xff]  ;;  %v689_v11 = vld [vmem:[%s1195_s3 + $0x148] sm:$0xff] }
  0x15   : > { %v256_v32 = vmax.f32 %v254_v24, 0.0  ;;  %v257_v35 = vmax.f32 %v1077_v30, 0.0  ;;  %906 = vmatpush3.bf16.msra.mxu0 %v903_v23  ;;  %872 = vmatprep.subr.bf16.mxu1 %v871_v39  ;;  %v935_v9 = vpack.c.bf16 %v687_v8, %v686_v7  ;;  %v939_v12 = vpack.c.bf16 %v689_v11, %v688_v10  ;;  %v690_v13 = vld [vmem:[%s1195_s3 + $0x150] sm:$0xff]  ;;  %v691_v14 = vld [vmem:[%s1195_s3 + $0x158] sm:$0xff]  ;;  %v692_v16 = vld [vmem:[%s1195_s3 + $0x160] sm:$0xff] }
  0x16   : > { %908 = vmatprep.subr.bf16.mxu0 %v907_v36  ;;  %v943_v15 = vpack.c.bf16 %v691_v14, %v690_v13  ;;  %v693_v17 = vld [vmem:[%s1195_s3 + $0x168] sm:$0xff]  ;;  %v694_v19 = vld [vmem:[%s1195_s3 + $0x170] sm:$0xff]  ;;  %v695_v20 = vld [vmem:[%s1195_s3 + $0x178] sm:$0xff] }
  0x17   : > { %260 = vst [vmem:[#allocation2 + $0x1] sm:$0xff] %v256_v32  ;;  %261 = vst [vmem:[#allocation2 + $0x9] sm:$0xff] %v257_v35  ;;  %786 = vmatprep.mubr.f32.mxu1 %v256_v32  ;;  %v947_v18 = vpack.c.bf16 %v693_v17, %v692_v16  ;;  %v951_v21 = vpack.c.bf16 %v695_v20, %v694_v19 }
  0x18   : > { %874 = vmatpush3.bf16.msra.mxu1 %v871_v39 }
  0x19   : > { %910 = vmatpush3.bf16.msra.mxu0 %v907_v36  ;;  %876 = vmatprep.subr.bf16.mxu1 %v875_v45 }
  0x1a   : > { %912 = vmatprep.subr.bf16.mxu0 %v911_v42 }
  0x1c   : > { %878 = vmatpush3.bf16.msra.mxu1 %v875_v45 }
  0x1d   : > { %914 = vmatpush3.bf16.msra.mxu0 %v911_v42  ;;  %880 = vmatprep.subr.bf16.mxu1 %v879_v52 }
  0x1e   : > { %v262_v46 = vld [vmem:[#allocation2] sm:$0xff]  ;;  %916 = vmatprep.subr.bf16.mxu0 %v915_v49  ;;  %v263_v1 = vld [vmem:[#allocation2 + $0x8] sm:$0xff] }
  0x1f   : > { %821 = vmatprep.mubr.f32.mxu0 %v262_v46  ;;  %v449_v3 = vld [vmem:[#allocation2 + $0x2] sm:$0xff]  ;;  %v450_v22 = vld [vmem:[#allocation2 + $0xa] sm:$0xff] }
  0x20   : > { %882 = vmatpush3.bf16.msra.mxu1 %v879_v52 }
  0x21   : > { %918 = vmatpush3.bf16.msra.mxu0 %v915_v49  ;;  %884 = vmatprep.subr.bf16.mxu1 %v883_v58 }
  0x22   : > { %920 = vmatprep.subr.bf16.mxu0 %v919_v55 }
  0x24   : > { %886 = vmatpush3.bf16.msra.mxu1 %v883_v58 }
  0x25   : > { %922 = vmatpush3.bf16.msra.mxu0 %v919_v55  ;;  %888 = vmatprep.subr.bf16.mxu1 %v887_v0 }
  0x26   : > { %924 = vmatprep.subr.bf16.mxu0 %v923_v61 }
  0x28   : > { %822 = vmatmul.mubr.f32.vlgmr.msra.gmra.mrb[0].mxu0 %v263_v1  ;;  %890 = vmatpush3.bf16.msra.mxu1 %v887_v0 }
  0x29   : > { %926 = vmatpush3.bf16.msra.mxu0 %v923_v61  ;;  %856 = vmatprep.mubr.f32.mxu0 %v449_v3 }
  0x2a   : > { %928 = vmatprep.subr.bf16.mxu0 %v927_v2 }
  0x2b   : > { %787 = vmatmul.mubr.f32.vlgmr.msra.gmra.mrb[0].mxu1 %v257_v35 }
  0x2d   : > { %930 = vmatpush3.bf16.msra.mxu0 %v927_v2 }
  0x2e   : > { %932 = vmatprep.subr.bf16.mxu0 %v931_v6 }
  0x31   : > { %934 = vmatpush3.bf16.msra.mxu0 %v931_v6 }
  0x32   : > { %936 = vmatprep.subr.bf16.mxu0 %v935_v9 }
  0x35   : > { %938 = vmatpush3.bf16.msra.mxu0 %v935_v9 }
  0x36   : > { %940 = vmatprep.subr.bf16.mxu0 %v939_v12 }
  0x39   : > { %942 = vmatpush3.bf16.msra.mxu0 %v939_v12 }
  0x3a   : > { %944 = vmatprep.subr.bf16.mxu0 %v943_v15 }
  0x3d   : > { %946 = vmatpush3.bf16.msra.mxu0 %v943_v15 }
  0x3e   : > { %948 = vmatprep.subr.bf16.mxu0 %v947_v18 }
  0x41   : > { %950 = vmatpush3.bf16.msra.mxu0 %v947_v18 }
  0x42   : > { %952 = vmatprep.subr.bf16.mxu0 %v951_v21 }
  0x45   : > { %954 = vmatpush3.bf16.msra.mxu0 %v951_v21 }
  0x48   : > { %857 = vmatmul.mubr.f32.vlgmr.msra.gmra.mrb[0].mxu0 %v450_v22 }
  0xfe   : > { %v788_v23 = vpop.f32.mrb[0].mxu1 }
  0xff   : > { %v365_v24 = vpop.f32.mrb[1].mxu1 }
 0x11b   : > { %v858_v25 = vpop.f32.mrb[0].mxu0 }
 0x11c   : > { %v955_v26 = vadd.f32 %v858_v25, %v788_v23  ;;  %v534_v27 = vpop.f32.mrb[1].mxu0 }
 0x11d   : > { %v956_v28 = vadd.f32 %v534_v27, %v365_v24 }
 0x11e   : > { %546 = vst [vmem:[%s231_s13 + $0x8] sm:$0xff] %v955_v26  ;;  %v555_v29 = vmul.f32 %v955_v26, %v955_v26 }
 0x11f   : > { %545 = vst [vmem:[%s231_s13] sm:$0xff] %v956_v28  ;;  %v547_v30 = vadd.f32 %v956_v28, %v955_v26  ;;  %v554_v31 = vmul.f32 %v956_v28, %v956_v28 }
 0x121   : > { %v548_v32 = vrot.slane %v547_v30, 4  ;;  %v556_v33 = vadd.f32 %v555_v29, %v554_v31 }
 0x123   : > { %v549_v34 = vadd.f32 %v548_v32, %v547_v30  ;;  %v557_v35 = vrot.slane %v556_v33, 4 }
 0x125   : > { %v550_v36 = vrot.slane %v549_v34, 2  ;;  %v558_v37 = vadd.f32 %v557_v35, %v556_v33 }
 0x127   : > { %v551_v38 = vadd.f32 %v550_v36, %v549_v34  ;;  %v559_v39 = vrot.slane %v558_v37, 2 }
 0x129   : > { %v552_v40 = vrot.slane %v551_v38, 1  ;;  %v560_v41 = vadd.f32 %v559_v39, %v558_v37 }
 0x12b   : > { %v561_v42 = vrot.slane %v560_v41, 1  ;;  %v553_v43 = vadd.f32 %v552_v40, %v551_v38 }
 0x12d   : > { %v562_v44 = vadd.f32 %v561_v42, %v560_v41 }
 0x12f   : > { %v564_v45 = vsel %vm563_vm0, %v553_v43, %v562_v44 }
 0x130   : > { %565 = vst [vmem:[%s235_s16] sm:$0x3] %v564_v45 }
 0x131 PF: > { %s16_s18 = sadd.s32 1, %s974_s18  }
 0x132   : > { %p13_p4 = scmp.ge.s32.totalorder %s16_s18, 4  }
 0x134   :  { %15 = sbr.rel (!%p13_p4) target bundleno = 1 (0x1), region = 80 }

// kernel: double_conv.5
= control target key start
LH: loop header
LB: loop body
LE: loop exit
PB: predicated region body
PF: predicated region fallthrough
CT: control target
= control target key end

     0   :  { %s301_s12 = smov 0   ;;  %s318_s0 = inlined_call_operand.vmem [shape: f32[2,16,128], index: 0, kind: input, shape index: {}]   ;;  %s319_s1 = inlined_call_operand.vmem [shape: f32[1,128], index: 1, kind: input, shape index: {}]   ;;  %s320_s2 = inlined_call_operand.vmem [shape: f32[1,128], index: 2, kind: input, shape index: {}]   ;;  %s321_s3 = inlined_call_operand.vmem [shape: f32[2,16,128], index: 3, kind: output, shape index: {}]  }
   0x1 LB: > { %s250_s13 = sadd.s32 4294967295, %s279_s12   ;;  %p254_p0 = scmp.ge.s32.totalorder %s279_s12, 1  ;;  %s279_s12 = sphi %s301_s12, %s13_s12  }
   0x2   : > { %p137_p1 = scmp.lt.s32.totalorder %s279_s12, 3 }
   0x4   : > { %p138_p2 = pnand %p254_p0, %p137_p1 }
   0x5   : > { %p161_p3 = scmp.lt.s32.totalorder (!%p138_p2), %s250_s13, 1  ;;  %v259_v0 = vld [vmem:[%s319_s1] ss:$0 sm:$0xff] (!%p138_p2) }
   0x6   : > { %141 = sbr.rel (%p138_p2) target bundleno = 24 (0x18), region = 32  ;;  %v260_v3 = vld [vmem:[%s320_s2] ss:$0 sm:$0xff] (!%p138_p2) }
   0xd   : > { %s323_s13 = smov (!%p161_p3, %s250_s13), 1 }
   0xe   : > { %s263_s14 = sshll.u32 %s323_s13, 4 }
   0xf   : > { %s165_s19 = scalar_lea.vmem %s318_s0, %s263_s14  ;;  %s170_s24 = scalar_lea.vmem %s321_s3, %s263_s14 }
  0x10   : > { %v171_v1 = vld [vmem:[%s165_s19] sm:$0xff]  ;;  %v172_v2 = vld [vmem:[%s165_s19 + $0x8] sm:$0xff] }
  0x11   : > { %v180_v4 = vmul.f32 %v259_v0, %v171_v1  ;;  %v181_v5 = vmul.f32 %v259_v0, %v172_v2 }
  0x13   : > { %v189_v6 = vadd.f32 %v260_v3, %v180_v4  ;;  %v190_v7 = vadd.f32 %v260_v3, %v181_v5 }
  0x15   : > { %v191_v8 = vmax.f32 %v189_v6, 0.0  ;;  %v192_v9 = vmax.f32 %v190_v7, 0.0 }
  0x17   : > { %193 = vst [vmem:[%s170_s24] sm:$0xff] %v191_v8  ;;  %194 = vst [vmem:[%s170_s24 + $0x8] sm:$0xff] %v192_v9 }
  0x18 PF: > { %s13_s12 = sadd.s32 1, %s279_s12  }
  0x19   : > { %p10_p4 = scmp.ge.s32.totalorder %s13_s12, 4  }
  0x1b   :  { %12 = sbr.rel (!%p10_p4) target bundleno = 1 (0x1), region = 62 }

</bundles_post_ra>
